<compile_context>
chip_gen: v7x
topology: tpu7x:2x2x1
jax: 0.10.0
libtpu: 0.0.40
codegen_flags: <defaults>
</compile_context>

<pallas_src>
import numpy as np
import jax
import jax.numpy as jnp
from jax.experimental import pallas as pl
from jax.experimental.pallas import tpu as pltpu


def _round_up(x: int, m: int) -> int:
    return ((x + m - 1) // m) * m


def build_group_masks(topics_T: jax.Array, x_ids: jax.Array, n_words: int, t_tile: int):
    """Fused membership kernel over the transposed (topics-on-lanes) layout.

    topics_T : [Wp, T_pad] int32  — topic word ids, -1 padding (words on sublanes,
                                    topics on lanes)
    x_ids    : [L] int32          — input document token ids (scalar-prefetched to SMEM)
    returns  : (masks_T [Wp, T_pad] f32, rep [1, T_pad] f32)
               masks_T[w, t] = 1 iff topic t's word w (w < n_words) appears in x
               rep[0, t]     = 1 iff topic t has any represented word
    """
    Wp, T_pad = topics_T.shape
    n_t = T_pad // t_tile
    x_1d = x_ids.astype(jnp.int32).reshape(-1)
    L = int(x_1d.shape[0])

    def kernel(x_ref, topics_ref, mask_ref, rep_ref):
        topics = topics_ref[...]                                  # [Wp, t_tile] int32

        # Membership probe: OR over all document tokens.
        if L <= 64:
            # Static, fully-unrolled probe with 4 interleaved accumulators
            # (shorter dependent OR chain, SMEM scalar load co-issues with VPU).
            accs = [jnp.zeros(topics.shape, dtype=jnp.bool_) for _ in range(4)]
            for j in range(L):
                accs[j & 3] = accs[j & 3] | (topics == x_ref[j])
            member = (accs[0] | accs[1]) | (accs[2] | accs[3])
        else:
            def body(j, acc):
                return acc | (topics == x_ref[j])
            member = jax.lax.fori_loop(
                0, L, body, jnp.zeros(topics.shape, dtype=jnp.bool_), unroll=8)

        # Kill matches on padded word rows (the -1 sentinel): only words < n_words
        # count, so negative / padding tokens in x can never flip mask or rep.
        valid = jax.lax.broadcasted_iota(jnp.int32, topics.shape, 0) < n_words
        member = member & valid

        mask_f = member.astype(jnp.float32)                       # single cast at the end
        mask_ref[...] = mask_f                                    # lane-dense unmasked stores
        # rep = sublane max of the already-materialized f32 mask (cast is needed
        # for the store anyway; bool-`any` decoupling is a conditional micro-opt).
        rep_ref[...] = jnp.max(mask_f, axis=0, keepdims=True)

    grid_spec = pltpu.PrefetchScalarGridSpec(
        num_scalar_prefetch=1,                       # x lands in SMEM before the grid runs
        grid=(n_t,),
        in_specs=[pl.BlockSpec((Wp, t_tile), lambda i, x: (0, i))],
        out_specs=(pl.BlockSpec((Wp, t_tile), lambda i, x: (0, i)),
                   pl.BlockSpec((1, t_tile), lambda i, x: (0, i))),
    )
    return pl.pallas_call(
        kernel,
        grid_spec=grid_spec,
        out_shape=(jax.ShapeDtypeStruct((Wp, T_pad), jnp.float32),
                   jax.ShapeDtypeStruct((1, T_pad), jnp.float32)),
        compiler_params=pltpu.CompilerParams(
            dimension_semantics=("parallel",)),      # topic axis: megacore-shardable
    )(x_1d, topics_T)


class ClusteringGroupsPallas:
    """JAX/Pallas port of ClusteringGroups.

    BERTopic.fit_transform (string clustering) has no device equivalent; its
    output (the per-topic representation word table) is synthesized
    deterministically from PRNGKey(seed) with the same shape role: T topics x
    W representative words.
    """

    def __init__(self, num_topics: int, words_per_topic: int, vocab_size: int,
                 distinct: int, scaling: float = 1.5, seed: int = 0):
        self.scaling = scaling
        self.distinct = distinct
        self.max_groups = int(scaling * distinct)
        # TODO(synk): BERTopic(language=...) fit on real string utterances runs on
        # host; the topic representation table is synthesized deterministically here.
        key = jax.random.PRNGKey(seed)
        self.topic_ids = jax.random.randint(
            key, (num_topics, words_per_topic), 0, vocab_size, dtype=jnp.int32)

        # --- transposed, lane-dense topic layout (independent of L, built once) ---
        T, W = num_topics, words_per_topic
        Wp = _round_up(W, 8)                                   # words on sublanes
        T128 = _round_up(T, 128)                               # topics on lanes

        # VMEM budget: ~2 MiB per block; 2 big arrays (topics in + mask out) x 2
        # pipeline buffers keeps residency ~8 MiB, under v5e's 16 MiB scoped default.
        budget_bytes = 2 * 1024 * 1024
        t_tile = (budget_bytes // (Wp * 4)) // 128 * 128
        t_tile = max(128, min(t_tile, T128))
        # v7x: prefer >= 2 grid steps so both TensorCores get work when T allows it.
        if T128 >= 256 and t_tile >= T128:
            t_tile = _round_up(T128 // 2, 128)
        T_pad = _round_up(T, t_tile)

        topics_T = jnp.full((Wp, T_pad), -1, dtype=jnp.int32)   # -1 never counted (valid mask)
        topics_T = topics_T.at[:W, :T].set(self.topic_ids.T)
        self.topics_T = topics_T
        self.t_tile = t_tile

    def forward(self, x_ids: jax.Array):
        T, W = self.topic_ids.shape
        L = int(x_ids.shape[0])
        assert W <= L, "topic representation longer than input (would index OOB in the reference)"

        masks_T, rep = build_group_masks(self.topics_T, x_ids, W, self.t_tile)

        # One tiny device->host transfer ([1, T_pad] floats) for the selection filter.
        rep_host = np.asarray(jax.device_get(rep))[0, :T] > 0.0

        # The `len(masks) <= max_groups` filter is inherently serial host logic
        # (faithfully mirrors the reference, including its off-by-one behaviour).
        sel = []
        for t in range(T):
            if rep_host[t] and len(sel) <= self.max_groups:
                sel.append(t)
        if not sel:
            return []

        # Single gather of the selected topic columns + one zero-pad to length L.
        idx = jnp.asarray(sel, dtype=jnp.int32)
        sel_masks = jnp.take(masks_T, idx, axis=1)[:W].T          # [n_sel, W]
        full = jnp.pad(sel_masks, ((0, 0), (0, L - W)))           # [n_sel, L]
        return [full[i] for i in range(len(sel))]


if __name__ == "__main__":
    # Small deterministic example: vocabulary of 32 token ids, input "document" of
    # 16 words, 10 topics with 8 representative words each, distinct=4 -> max_groups=6.
    vocab_size = 32
    L = 16          # len(x)
    T = 10          # number of topics
    W = 8           # words per topic representation

    module = ClusteringGroupsPallas(num_topics=T, words_per_topic=W,
                                    vocab_size=vocab_size, distinct=4,
                                    scaling=1.5, seed=0)

    key_x = jax.random.PRNGKey(0)
    _, key_x = jax.random.split(key_x)
    x_ids = jax.random.randint(key_x, (L,), 0, vocab_size, dtype=jnp.int32)

    masks = module.forward(x_ids)
    for m in masks:
        jax.block_until_ready(m)

    # Reference check against the PyTorch semantics (pure numpy).
    topics_np = np.asarray(module.topic_ids)
    x_np = np.asarray(x_ids)
    ref_masks = []
    for t in range(T):
        mask = np.zeros(L, dtype=np.float32)
        represented = False
        for w in range(W):
            if topics_np[t, w] in x_np:
                mask[w] = 1.0
                represented = True
        if represented and len(ref_masks) <= module.max_groups:
            ref_masks.append(mask)

    assert len(ref_masks) == len(masks), "mask count mismatch"
    for a, b in zip(ref_masks, masks):
        assert np.array_equal(a, np.asarray(b)), "mask values mismatch"

    print("KERNEL_OK")
</pallas_src>

<mosaic_0001>
module attributes {stable_mosaic.version = 11 : i64} {
  func.func @kernel(%arg0: i32, %arg1: memref<16xi32, #tpu.memory_space<smem>>, %arg2: memref<8x128xi32, #tpu.memory_space<vmem>>, %arg3: memref<8x128xf32, #tpu.memory_space<vmem>>, %arg4: memref<1x128xf32, #tpu.memory_space<vmem>>) attributes {dimension_semantics = [#tpu.dimension_semantics<parallel>], iteration_bounds = array<i64: 1>, scalar_prefetch = 1 : i64, scratch_operands = 0 : i64, tpu.core_type = #tpu.core_type<tc>, window_params = [{transform_indices = @transform_0, window_bounds = array<i64: 8, 128>}, {transform_indices = @transform_1, window_bounds = array<i64: 8, 128>}, {transform_indices = @transform_2, window_bounds = array<i64: 1, 128>}]} {
    %c0 = arith.constant 0 : index
    %c0_0 = arith.constant 0 : index
    %0 = vector.load %arg2[%c0, %c0_0] : memref<8x128xi32, #tpu.memory_space<vmem>>, vector<8x128xi32>
    %false = arith.constant false
    %1 = vector.broadcast %false : i1 to vector<8x128xi1>
    %false_1 = arith.constant false
    %2 = vector.broadcast %false_1 : i1 to vector<8x128xi1>
    %false_2 = arith.constant false
    %3 = vector.broadcast %false_2 : i1 to vector<8x128xi1>
    %false_3 = arith.constant false
    %4 = vector.broadcast %false_3 : i1 to vector<8x128xi1>
    %c0_4 = arith.constant 0 : index
    %5 = memref.load %arg1[%c0_4] : memref<16xi32, #tpu.memory_space<smem>>
    %6 = vector.broadcast %5 : i32 to vector<8x128xi32>
    %7 = arith.cmpi eq, %0, %6 : vector<8x128xi32>
    %8 = arith.ori %1, %7 : vector<8x128xi1>
    %c1 = arith.constant 1 : index
    %9 = memref.load %arg1[%c1] : memref<16xi32, #tpu.memory_space<smem>>
    %10 = vector.broadcast %9 : i32 to vector<8x128xi32>
    %11 = arith.cmpi eq, %0, %10 : vector<8x128xi32>
    %12 = arith.ori %2, %11 : vector<8x128xi1>
    %c2 = arith.constant 2 : index
    %13 = memref.load %arg1[%c2] : memref<16xi32, #tpu.memory_space<smem>>
    %14 = vector.broadcast %13 : i32 to vector<8x128xi32>
    %15 = arith.cmpi eq, %0, %14 : vector<8x128xi32>
    %16 = arith.ori %3, %15 : vector<8x128xi1>
    %c3 = arith.constant 3 : index
    %17 = memref.load %arg1[%c3] : memref<16xi32, #tpu.memory_space<smem>>
    %18 = vector.broadcast %17 : i32 to vector<8x128xi32>
    %19 = arith.cmpi eq, %0, %18 : vector<8x128xi32>
    %20 = arith.ori %4, %19 : vector<8x128xi1>
    %c4 = arith.constant 4 : index
    %21 = memref.load %arg1[%c4] : memref<16xi32, #tpu.memory_space<smem>>
    %22 = vector.broadcast %21 : i32 to vector<8x128xi32>
    %23 = arith.cmpi eq, %0, %22 : vector<8x128xi32>
    %24 = arith.ori %8, %23 : vector<8x128xi1>
    %c5 = arith.constant 5 : index
    %25 = memref.load %arg1[%c5] : memref<16xi32, #tpu.memory_space<smem>>
    %26 = vector.broadcast %25 : i32 to vector<8x128xi32>
    %27 = arith.cmpi eq, %0, %26 : vector<8x128xi32>
    %28 = arith.ori %12, %27 : vector<8x128xi1>
    %c6 = arith.constant 6 : index
    %29 = memref.load %arg1[%c6] : memref<16xi32, #tpu.memory_space<smem>>
    %30 = vector.broadcast %29 : i32 to vector<8x128xi32>
    %31 = arith.cmpi eq, %0, %30 : vector<8x128xi32>
    %32 = arith.ori %16, %31 : vector<8x128xi1>
    %c7 = arith.constant 7 : index
    %33 = memref.load %arg1[%c7] : memref<16xi32, #tpu.memory_space<smem>>
    %34 = vector.broadcast %33 : i32 to vector<8x128xi32>
    %35 = arith.cmpi eq, %0, %34 : vector<8x128xi32>
    %36 = arith.ori %20, %35 : vector<8x128xi1>
    %c8 = arith.constant 8 : index
    %37 = memref.load %arg1[%c8] : memref<16xi32, #tpu.memory_space<smem>>
    %38 = vector.broadcast %37 : i32 to vector<8x128xi32>
    %39 = arith.cmpi eq, %0, %38 : vector<8x128xi32>
    %40 = arith.ori %24, %39 : vector<8x128xi1>
    %c9 = arith.constant 9 : index
    %41 = memref.load %arg1[%c9] : memref<16xi32, #tpu.memory_space<smem>>
    %42 = vector.broadcast %41 : i32 to vector<8x128xi32>
    %43 = arith.cmpi eq, %0, %42 : vector<8x128xi32>
    %44 = arith.ori %28, %43 : vector<8x128xi1>
    %c10 = arith.constant 10 : index
    %45 = memref.load %arg1[%c10] : memref<16xi32, #tpu.memory_space<smem>>
    %46 = vector.broadcast %45 : i32 to vector<8x128xi32>
    %47 = arith.cmpi eq, %0, %46 : vector<8x128xi32>
    %48 = arith.ori %32, %47 : vector<8x128xi1>
    %c11 = arith.constant 11 : index
    %49 = memref.load %arg1[%c11] : memref<16xi32, #tpu.memory_space<smem>>
    %50 = vector.broadcast %49 : i32 to vector<8x128xi32>
    %51 = arith.cmpi eq, %0, %50 : vector<8x128xi32>
    %52 = arith.ori %36, %51 : vector<8x128xi1>
    %c12 = arith.constant 12 : index
    %53 = memref.load %arg1[%c12] : memref<16xi32, #tpu.memory_space<smem>>
    %54 = vector.broadcast %53 : i32 to vector<8x128xi32>
    %55 = arith.cmpi eq, %0, %54 : vector<8x128xi32>
    %56 = arith.ori %40, %55 : vector<8x128xi1>
    %c13 = arith.constant 13 : index
    %57 = memref.load %arg1[%c13] : memref<16xi32, #tpu.memory_space<smem>>
    %58 = vector.broadcast %57 : i32 to vector<8x128xi32>
    %59 = arith.cmpi eq, %0, %58 : vector<8x128xi32>
    %60 = arith.ori %44, %59 : vector<8x128xi1>
    %c14 = arith.constant 14 : index
    %61 = memref.load %arg1[%c14] : memref<16xi32, #tpu.memory_space<smem>>
    %62 = vector.broadcast %61 : i32 to vector<8x128xi32>
    %63 = arith.cmpi eq, %0, %62 : vector<8x128xi32>
    %64 = arith.ori %48, %63 : vector<8x128xi1>
    %c15 = arith.constant 15 : index
    %65 = memref.load %arg1[%c15] : memref<16xi32, #tpu.memory_space<smem>>
    %66 = vector.broadcast %65 : i32 to vector<8x128xi32>
    %67 = arith.cmpi eq, %0, %66 : vector<8x128xi32>
    %68 = arith.ori %52, %67 : vector<8x128xi1>
    %69 = arith.ori %56, %60 : vector<8x128xi1>
    %70 = arith.ori %64, %68 : vector<8x128xi1>
    %71 = arith.ori %69, %70 : vector<8x128xi1>
    %72 = tpu.iota {dimensions = array<i32: 0>} : vector<8x128xi32>
    %c8_i32 = arith.constant 8 : i32
    %73 = vector.broadcast %c8_i32 : i32 to vector<8x128xi32>
    %74 = arith.cmpi slt, %72, %73 : vector<8x128xi32>
    %75 = arith.andi %71, %74 : vector<8x128xi1>
    %76 = arith.extui %75 : vector<8x128xi1> to vector<8x128xi32>
    %77 = arith.sitofp %76 : vector<8x128xi32> to vector<8x128xf32>
    %c0_5 = arith.constant 0 : index
    %c0_6 = arith.constant 0 : index
    %78 = vector.load %arg3[%c0_5, %c0_6] : memref<8x128xf32, #tpu.memory_space<vmem>>, vector<8x128xf32>
    tpu.vector_store %arg3[%c0_5, %c0_6], %77 {strides = array<i32>} : memref<8x128xf32, #tpu.memory_space<vmem>>, vector<8x128xf32>,
    %cst = arith.constant dense<0xFF800000> : vector<128xf32>
    %79 = vector.multi_reduction <maximumf>, %77, %cst [0] : vector<8x128xf32> to vector<128xf32>
    %80 = vector.shape_cast %79 : vector<128xf32> to vector<1x128xf32>
    %c0_7 = arith.constant 0 : index
    %c0_8 = arith.constant 0 : index
    %81 = vector.load %arg4[%c0_7, %c0_8] : memref<1x128xf32, #tpu.memory_space<vmem>>, vector<1x128xf32>
    tpu.vector_store %arg4[%c0_7, %c0_8], %80 {strides = array<i32>} : memref<1x128xf32, #tpu.memory_space<vmem>>, vector<1x128xf32>,
    return
  }
  func.func @transform_0(%arg0: i32, %arg1: memref<16xi32, #tpu.memory_space<smem>>) -> (i32, i32) {
    %c0_i32 = arith.constant 0 : i32
    %c0_i32_0 = arith.constant 0 : i32
    return %c0_i32, %arg0 : i32, i32
  }
  func.func @transform_1(%arg0: i32, %arg1: memref<16xi32, #tpu.memory_space<smem>>) -> (i32, i32) {
    %c0_i32 = arith.constant 0 : i32
    %c0_i32_0 = arith.constant 0 : i32
    return %c0_i32, %arg0 : i32, i32
  }
  func.func @transform_2(%arg0: i32, %arg1: memref<16xi32, #tpu.memory_space<smem>>) -> (i32, i32) {
    %c0_i32 = arith.constant 0 : i32
    %c0_i32_0 = arith.constant 0 : i32
    return %c0_i32, %arg0 : i32, i32
  }
}

</mosaic_0001>

<bundles_post_ra>
// kernel: tpu_custom_call.1
= control target key start
LH: loop header
LB: loop body
LE: loop exit
PB: predicated region body
PF: predicated region fallthrough
CT: control target
= control target key end

     0   :  { %s400_s0 = inlined_call_operand.hbm [shape: s32[16], index: 0, kind: input, shape index: {}]   ;;  %s401_s1 = inlined_call_operand.hbm [shape: s32[8,128], index: 1, kind: input, shape index: {}]   ;;  %s402_s2 = inlined_call_operand.hbm [shape: f32[8,128], index: 2, kind: output, shape index: {0}]   ;;  %s403_s3 = inlined_call_operand.hbm [shape: f32[1,128], index: 3, kind: output, shape index: {1}]  }
   0x1   :  { %s157_s14 = scalar_lea.hbm %s400_s0, 16 }
   0x2   :  { %p158_p0 = scmp.ne.s32.totalorder %s400_s0, %s157_s14  ;;  %p161_p1 = scmp.lt.u32.totalorder %s157_s14, %s400_s0 }
   0x4   :  { %p163_p2 = pnand %p161_p1, %p158_p0 }
   0x6   :  { %166 = shalt.err (!%p163_p2)  }
   0x7   :  { %s241_s19 = smov [#allocation3]  }
   0x8   :  { %10 = dma.hbm_to_smem %s400_s0, 16, %s241_s19, [#allocation2] }
   0x9   :  { %233 = dma.done.wait [#allocation2], 16 }
   0xa   :  { %234 = vsyncadd [#allocation2], 4294967280 }
   0xb   :  { %12 = sfence }
   0xc   :  { %13 = vsyncpa [#allocation5], 0 }
   0xd   :  { %14 = vsyncpa [#allocation6], 0 }
   0xe   :  { %15 = vsyncpa [#allocation9], 0  ;;  %s242_s22 = smov [#allocation4]   ;;  %s167_s26 = scalar_lea.hbm %s401_s1, 128 }
   0xf   :  { %s22_s23 = sshll.u32 %s242_s22, 4  ;;  %p168_p3 = scmp.ne.s32.totalorder %s401_s1, %s167_s26  ;;  %s23_s23 = int_to_ptr.vmem [resolvable:$true] %s22_s23 }
  0x10   :  { %p171_p4 = scmp.lt.u32.totalorder %s167_s26, %s401_s1 }
  0x12   :  { %p173_p5 = pnand %p171_p4, %p168_p3 }
  0x14   :  { %176 = shalt.err (!%p173_p5)
}
  0x15   :  { %s177_s0 = scalar_lea.vmem %s23_s23, 128  ;;  %p182_p7 = scmp.lt.s32.totalorder %s23_s23, %s23_s23 }
  0x16   :  { %p178_p6 = scmp.ne.s32.totalorder %s23_s23, %s177_s0  ;;  %p183_p8 = scmp.lt.s32.totalorder %s177_s0, %s177_s0 }
  0x18   :  { %p184_p9 = por %p183_p8, %p182_p7 }
  0x1a   :  { %p185_p10 = pnand %p184_p9, %p178_p6 }
  0x1c   :  { %188 = shalt.err (!%p185_p10)
}
  0x1d   :  { %25 = dma.hbm_to_vmem [thread:$0]  %s401_s1, 128, %s23_s23, [#allocation5]  }
  0x1e   :  { %235 = dma.done.wait [#allocation5], 128  }
  0x1f   :  { %236 = vsyncadd [#allocation5], 4294967168  ;;  %s30_s6 = sld [smem:[#allocation3]]  ;;  %s136_s7 = sld [smem:[#allocation3 + $0x1]]  ;;  %v29_v0 = vld [vmem:[#allocation4] sm:$0xff]  ;;  %v244_v27 = vmov 0.0  }
  0x20   :  { %s137_s8 = sld [smem:[#allocation3 + $0x2]]  ;;  %s138_s9 = sld [smem:[#allocation3 + $0x3]] }
  0x21   :  { %s139_s10 = sld [smem:[#allocation3 + $0x4]]  ;;  %s140_s11 = sld [smem:[#allocation3 + $0x5]] }
  0x22   :  { %s141_s12 = sld [smem:[#allocation3 + $0x6]]  ;;  %s142_s13 = sld [smem:[#allocation3 + $0x7]] }
  0x23   :  { %s143_s14 = sld [smem:[#allocation3 + $0x8]]  ;;  %s290_s15 = sld [smem:[#allocation3 + $0x9]] }
  0x24   :  { %s292_s16 = sld [smem:[#allocation3 + $0xa]]  ;;  %s294_s17 = sld [smem:[#allocation3 + $0xb]] }
  0x25   :  { %v31_v1 = vstv %s30_s6  ;;  %v34_v2 = vstv %s136_s7  ;;  %s296_s1 = sld [smem:[#allocation3 + $0xc]]  ;;  %s298_s18 = sld [smem:[#allocation3 + $0xd]] }
  0x26   :  { %vm300_vm0 = vcmp.eq.s32.totalorder %v29_v0, %v31_v1  ;;  %vm304_vm1 = vcmp.eq.s32.totalorder %v29_v0, %v34_v2  ;;  %v37_v5 = vstv %s137_s8  ;;  %v40_v6 = vstv %s138_s9  ;;  %s308_s19 = sld [smem:[#allocation3 + $0xe]]  ;;  %s310_s20 = sld [smem:[#allocation3 + $0xf]] }
  0x27   :  { %vm312_vm2 = vcmp.eq.s32.totalorder %v29_v0, %v37_v5  ;;  %vm316_vm3 = vcmp.eq.s32.totalorder %v29_v0, %v40_v6  ;;  %v43_v9 = vstv %s139_s10  ;;  %v47_v10 = vstv %s140_s11  ;;  %s243_s21 = smov [#allocation7]  }
  0x28   :  { %vm320_vm4 = vcmp.eq.s32.totalorder %v29_v0, %v43_v9  ;;  %vm324_vm5 = vcmp.eq.s32.totalorder %v29_v0, %v47_v10  ;;  %v51_v13 = vstv %s141_s12  ;;  %v55_v14 = vstv %s142_s13  ;;  %s113_s22 = sshll.u32 %s243_s21, 4  ;;  %s114_s22 = int_to_ptr.vmem [resolvable:$true] %s113_s22 }
  0x29   :  { %vm45_vm6 = vmor %vm300_vm0, %vm320_vm4  ;;  %vm332_vm7 = vcmp.eq.s32.totalorder %v29_v0, %v51_v13  ;;  %vm336_vm8 = vcmp.eq.s32.totalorder %v29_v0, %v55_v14  ;;  %v59_v17 = vstv %s143_s14  ;;  %v63_v18 = vstv %s290_s15  ;;  %s189_s23 = scalar_lea.vmem %s114_s22, 128  ;;  %p194_p12 = scmp.lt.s32.totalorder %s114_s22, %s114_s22 }
  0x2a   :  { %vm49_vm9 = vmor %vm304_vm1, %vm324_vm5  ;;  %vm60_vm10 = vcmp.eq.s32.totalorder %v29_v0, %v59_v17  ;;  %v67_v19 = vstv %s292_s16  ;;  %v71_v20 = vstv %s294_s17  ;;  %vm64_vm12 = vcmp.eq.s32.totalorder %v29_v0, %v63_v18  ;;  %p190_p11 = scmp.ne.s32.totalorder %s114_s22, %s189_s23  ;;  %p195_p13 = scmp.lt.s32.totalorder %s189_s23, %s189_s23 }
  0x2b   :  { %vm53_vm11 = vmor %vm312_vm2, %vm332_vm7  ;;  %v75_v21 = vstv %s296_s1  ;;  %vm68_vm14 = vcmp.eq.s32.totalorder %v29_v0, %v67_v19  ;;  %v79_v22 = vstv %s298_s18  ;;  %vm72_vm1 = vcmp.eq.s32.totalorder %v29_v0, %v71_v20 }
  0x2c   :  { %vm57_vm13 = vmor %vm316_vm3, %vm336_vm8  ;;  %v83_v24 = vstv %s308_s19  ;;  %vm76_vm5 = vcmp.eq.s32.totalorder %v29_v0, %v75_v21  ;;  %v87_v26 = vstv %s310_s20  ;;  %vm80_vm7 = vcmp.eq.s32.totalorder %v29_v0, %v79_v22  ;;  %p196_p0 = por %p195_p13, %p194_p12 }
  0x2d   :  { %vm362_vm15 = vmor %vm45_vm6, %vm60_vm10  ;;  %vm84_vm0 = vcmp.eq.s32.totalorder %v29_v0, %v83_v24  ;;  %vm88_vm6 = vcmp.eq.s32.totalorder %v29_v0, %v87_v26 }
  0x2e   :  { %vm367_vm2 = vmor %vm49_vm9, %vm64_vm12  ;;  %p197_p1 = pnand %p196_p0, %p190_p11 }
  0x2f   :  { %vm69_vm3 = vmor %vm53_vm11, %vm68_vm14 }
  0x30   :  { %vm73_vm8 = vmor %vm57_vm13, %vm72_vm1 }
  0x31   :  { %vm77_vm4 = vmor %vm362_vm15, %vm76_vm5 }
  0x32   :  { %vm81_vm10 = vmor %vm367_vm2, %vm80_vm7 }
  0x33   :  { %vm85_vm9 = vmor %vm69_vm3, %vm84_vm0 }
  0x34   :  { %vm89_vm12 = vmor %vm73_vm8, %vm88_vm6 }
  0x35   :  { %vm90_vm11 = vmor %vm77_vm4, %vm81_vm10 }
  0x36   :  { %vm91_vm14 = vmor %vm85_vm9, %vm89_vm12 }
  0x37   :  { %vm92_vm1 = vmor %vm90_vm11, %vm91_vm14 }
  0x38   :  { %v151_v28 = vsel %vm92_vm1, 1.0, %v244_v27 }
  0x39   :  { %99 = vst [vmem:[#allocation7] sm:$0xff] %v151_v28  ;;  %v100_v29 = vrot.slane %v151_v28, 4 }
  0x3a   :  { %200 = shalt.err (!%p197_p1)
}
  0x3b   :  { %s201_s26 = scalar_lea.hbm %s402_s2, 128 }
  0x3c   :  { %p202_p2 = scmp.ne.s32.totalorder %s402_s2, %s201_s26  ;;  %p205_p3 = scmp.lt.u32.totalorder %s201_s26, %s402_s2 }
  0x3e   :  { %p207_p4 = pnand %p205_p3, %p202_p2 }
  0x40   :  { %210 = shalt.err (!%p207_p4)
}
  0x41   :  { %116 = dma.vmem_to_hbm [thread:$0]  %s114_s22, 128, %s402_s2, [#allocation6]   ;;  %v101_v30 = vmax.f32 %v151_v28, %v100_v29 }
  0x42   :  { %s245_s5 = smov [#allocation8]  }
  0x43   :  { %v102_v31 = vrot.slane %v101_v30, 2  ;;  %s123_s6 = sshll.u32 %s245_s5, 4  ;;  %s124_s6 = int_to_ptr.vmem [resolvable:$true] %s123_s6 }
  0x44   :  { %s211_s7 = scalar_lea.vmem %s124_s6, 16  ;;  %s215_s8 = scalar_lea.vmem %s124_s6, 32 }
  0x45   :  { %v103_v32 = vmax.f32 %v101_v30, %v102_v31  ;;  %p212_p5 = scmp.ne.s32.totalorder %s124_s6, %s211_s7  ;;  %p216_p6 = scmp.lt.s32.totalorder %s124_s6, %s124_s6 }
  0x46   :  { %p217_p7 = scmp.lt.s32.totalorder %s215_s8, %s211_s7 }
  0x47   :  { %v104_v33 = vrot.slane %v103_v32, 1 }
  0x48   :  { %p218_p8 = por %p217_p7, %p216_p6 }
  0x49   :  { %v105_v34 = vmax.f32 %v103_v32, %v104_v33 }
  0x4a   :  { %p219_p9 = pnand %p218_p8, %p212_p5 }
  0x4b   :  { %106 = vst [vmem:[#allocation8] sm:$0x1] %v105_v34 }
  0x4c   :  { %222 = shalt.err (!%p219_p9)
}
  0x4d   :  { %s223_s2 = scalar_lea.hbm %s403_s3, 16 }
  0x4e   :  { %p224_p10 = scmp.ne.s32.totalorder %s403_s3, %s223_s2  ;;  %p227_p11 = scmp.lt.u32.totalorder %s223_s2, %s403_s3 }
  0x50   :  { %p229_p12 = pnand %p227_p11, %p224_p10 }
  0x52   :  { %232 = shalt.err (!%p229_p12)
}
  0x53   :  { %126 = dma.vmem_to_hbm [thread:$0]  %s124_s6, 16, %s403_s3, [#allocation9]  }
  0x54   :  { %237 = dma.done.wait [#allocation6], 128  }
  0x55   :  { %238 = vsyncadd [#allocation6], 4294967168 }
  0x56   :  { %239 = dma.done.wait [#allocation9], 16  }
  0x57   :  { %240 = vsyncadd [#allocation9], 4294967280 }
  0x58   :  { %133 = vsyncpa [#allocation5], 1 }
  0x59   :  { %134 = vsyncpa [#allocation6], 1 }
  0x5a   :  { %135 = vsyncpa [#allocation9], 1 }

</bundles_post_ra>
